<compile_context>
chip_gen: v5e
topology: v5e:2x2
jax: 0.10.0
libtpu: 0.0.40
codegen_flags: <defaults>
</compile_context>

<pallas_src>
import functools

import jax
import jax.numpy as jnp
from jax.experimental import pallas as pl
from jax.experimental.pallas import tpu as pltpu


_VMEM_LIMIT_BYTES = 48 * 1024 * 1024  # safe on v7x (64 MiB physical), raises v5e/v6e defaults


# ----------------------------------------------------------------- kernels ---
def gcn_layer1_kernel(adj_ref, feat_ref, b1_ref, w2_ref, out_ref):
    """out[i,:] = relu(adj[i,:] @ xw1 + b1) @ w2   (layer-2 feature slab, bf16)."""
    acc = jnp.dot(adj_ref[...], feat_ref[...], preferred_element_type=jnp.float32)
    h = jnp.maximum(acc + b1_ref[...], 0.0).astype(w2_ref.dtype)
    # Fused tiny transform: (tm,128)@(128,128) hides under the adj DMA.
    out_ref[...] = jnp.dot(
        h, w2_ref[...], preferred_element_type=jnp.float32
    ).astype(out_ref.dtype)


def gcn_layer2_kernel(adj_ref, feat_ref, b2_ref, out_ref):
    """out[i,:] = adj[i,:] @ hw2 + b2   (final logits, f32)."""
    acc = jnp.dot(adj_ref[...], feat_ref[...], preferred_element_type=jnp.float32)
    out_ref[...] = (acc + b2_ref[...]).astype(out_ref.dtype)


# ----------------------------------------------------------------- wrapper ---
def _round_up(x, m):
    return ((x + m - 1) // m) * m


def _layer1(adj_bf, xw1_bf, b1p, w2p_bf, *, tm):
    n_pad = adj_bf.shape[0]
    h_pad = xw1_bf.shape[1]
    c_pad = w2p_bf.shape[1]
    grid = (n_pad // tm,)

    flops = 2 * n_pad * n_pad * h_pad + 2 * n_pad * h_pad * c_pad
    bytes_accessed = (
        adj_bf.size * 2 + xw1_bf.size * 2 + w2p_bf.size * 2 + b1p.size * 4
        + n_pad * c_pad * 2
    )

    return pl.pallas_call(
        gcn_layer1_kernel,
        out_shape=jax.ShapeDtypeStruct((n_pad, c_pad), jnp.bfloat16),
        grid_spec=pltpu.PrefetchScalarGridSpec(
            num_scalar_prefetch=0,
            grid=grid,
            in_specs=[
                pl.BlockSpec((tm, n_pad), lambda i: (i, 0)),      # adj row stripe (streamed)
                pl.BlockSpec((n_pad, h_pad), lambda i: (0, 0)),   # xw1 slab (VMEM-resident)
                pl.BlockSpec((1, h_pad), lambda i: (0, 0)),       # b1 (resident)
                pl.BlockSpec((h_pad, c_pad), lambda i: (0, 0)),   # w2 (resident)
            ],
            out_specs=pl.BlockSpec((tm, c_pad), lambda i: (i, 0)),
        ),
        compiler_params=pltpu.CompilerParams(
            dimension_semantics=("parallel",),
            vmem_limit_bytes=_VMEM_LIMIT_BYTES,
        ),
        cost_estimate=pl.CostEstimate(
            flops=flops, transcendentals=0, bytes_accessed=bytes_accessed
        ),
    )(adj_bf, xw1_bf, b1p, w2p_bf)


def _layer2(adj_bf, hw2_bf, b2p, *, tm):
    n_pad = adj_bf.shape[0]
    c_pad = hw2_bf.shape[1]
    grid = (n_pad // tm,)

    flops = 2 * n_pad * n_pad * c_pad
    bytes_accessed = (
        adj_bf.size * 2 + hw2_bf.size * 2 + b2p.size * 4 + n_pad * c_pad * 4
    )

    return pl.pallas_call(
        gcn_layer2_kernel,
        out_shape=jax.ShapeDtypeStruct((n_pad, c_pad), jnp.float32),
        grid_spec=pltpu.PrefetchScalarGridSpec(
            num_scalar_prefetch=0,
            grid=grid,
            in_specs=[
                pl.BlockSpec((tm, n_pad), lambda i: (i, 0)),      # adj row stripe (streamed)
                pl.BlockSpec((n_pad, c_pad), lambda i: (0, 0)),   # hw2 slab (resident)
                pl.BlockSpec((1, c_pad), lambda i: (0, 0)),       # b2 (resident)
            ],
            out_specs=pl.BlockSpec((tm, c_pad), lambda i: (i, 0)),
        ),
        compiler_params=pltpu.CompilerParams(
            dimension_semantics=("parallel",),
            vmem_limit_bytes=_VMEM_LIMIT_BYTES,
        ),
        cost_estimate=pl.CostEstimate(
            flops=flops, transcendentals=0, bytes_accessed=bytes_accessed
        ),
    )(adj_bf, hw2_bf, b2p)


@functools.partial(jax.jit, static_argnames=("tm",))
def gcn_forward(adj_bf, x, w1, b1, w2, b2, *, tm=128):
    """adj_bf: (n_pad, n_pad) bf16, pre-padded normalized adjacency (tm | n_pad)."""
    n = x.shape[0]
    n_pad = adj_bf.shape[0]
    h = w1.shape[1]
    c = w2.shape[1]

    lane = 128
    h_pad = _round_up(h, lane)
    c_pad = _round_up(c, lane)

    # Zero-pad params to lane-dense widths (exact: padded channels stay zero).
    w1p = jnp.pad(w1, ((0, 0), (0, h_pad - h)))
    b1p = jnp.pad(b1, ((0, 0), (0, h_pad - h)))
    w2p = jnp.pad(w2, ((0, h_pad - h), (0, c_pad - c))).astype(jnp.bfloat16)
    b2p = jnp.pad(b2, ((0, 0), (0, c_pad - c)))

    # Tiny dense transform X @ W1 (~0.1% of FLOPs) stays in XLA; cast then pad.
    xw1 = jnp.dot(x, w1p, preferred_element_type=jnp.float32).astype(jnp.bfloat16)
    xw1 = jnp.pad(xw1, ((0, n_pad - n), (0, 0)))

    # Layer 1 (aggregate + bias + relu + fused @W2) -> layer-2 feature slab.
    hw2 = _layer1(adj_bf, xw1, b1p, w2p, tm=tm)
    # TODO(synk): dropout(p=0.5) is identity here (eval mode); training would use pltpu.prng_*.

    # Layer 2 (aggregate + bias).
    out = _layer2(adj_bf, hw2, b2p, tm=tm)
    return out[:n, :c]


# --------------------------------------------------------------- JAX glue ----
def normalized_adjacency(edge_index, num_nodes):
    """Dense GCN-normalized adjacency with self loops (PyG GCNConv semantics)."""
    # TODO(synk): duplicate edges / pre-existing self loops are not deduped (matches
    # the dense-scatter construction used by the in-file reference).
    row, col = edge_index[0], edge_index[1]
    loop = jnp.arange(num_nodes, dtype=edge_index.dtype)
    row = jnp.concatenate([row, loop])
    col = jnp.concatenate([col, loop])
    deg = jnp.zeros((num_nodes,), jnp.float32).at[col].add(1.0)
    dinv = jnp.where(deg > 0, 1.0 / jnp.sqrt(deg), 0.0)
    norm = dinv[row] * dinv[col]
    adj = jnp.zeros((num_nodes, num_nodes), jnp.float32).at[col, row].add(norm)
    return adj


def prepare_adjacency(adj, n_pad):
    """Cast to bf16 BEFORE padding (halves the transient) and pad once, outside jit."""
    n = adj.shape[0]
    return jnp.pad(adj.astype(jnp.bfloat16), ((0, n_pad - n), (0, n_pad - n)))


def glorot(key, shape):
    fan_in, fan_out = shape
    limit = jnp.sqrt(6.0 / (fan_in + fan_out))
    return jax.random.uniform(key, shape, jnp.float32, -limit, limit)


def reference_forward(adj, x, w1, b1, w2, b2):
    """Reference following the same numeric path (bf16 operands, f32 accumulation)."""
    adj_bf = adj.astype(jnp.bfloat16)
    xw1 = jnp.dot(x, w1, preferred_element_type=jnp.float32).astype(jnp.bfloat16)
    h = jnp.dot(adj_bf, xw1, preferred_element_type=jnp.float32) + b1
    h = jnp.maximum(h, 0.0).astype(jnp.bfloat16)
    hw2 = jnp.dot(h, w2.astype(jnp.bfloat16), preferred_element_type=jnp.float32)
    hw2 = hw2.astype(jnp.bfloat16)
    return jnp.dot(adj_bf, hw2, preferred_element_type=jnp.float32) + b2


# -------------------------------------------------------------------- main ---
if __name__ == "__main__":
    # small synthetic stand-in for the Planetoid/PubMed graph
    N = 300           # nodes
    F_IN = 16         # dataset.num_features (PubMed: 500)
    H = 32            # hidden_channels
    C = 3             # dataset.num_classes (PubMed: 3)
    E = 1200          # directed edges before symmetrization
    TM = 128          # row-stripe height (v7x-safe; v6e can use 256-512)

    key = jax.random.PRNGKey(0)
    k_x, k_e1, k_e2, k_w1, k_w2, k_b1, k_b2 = jax.random.split(key, 7)

    x = jax.random.normal(k_x, (N, F_IN), jnp.float32)

    src = jax.random.randint(k_e1, (E,), 0, N, jnp.int32)
    dst = jax.random.randint(k_e2, (E,), 0, N, jnp.int32)
    edge_index = jnp.stack(
        [jnp.concatenate([src, dst]), jnp.concatenate([dst, src])], axis=0
    )

    # glorot weights (PyG GCNConv default); small random biases to exercise the bias path
    w1 = glorot(k_w1, (F_IN, H))
    b1 = 0.1 * jax.random.normal(k_b1, (1, H), jnp.float32)
    w2 = glorot(k_w2, (H, C))
    b2 = 0.1 * jax.random.normal(k_b2, (1, C), jnp.float32)

    adj = normalized_adjacency(edge_index, N)

    n_pad = _round_up(N, TM)                     # padding decoupled from any K tiling
    adj_bf = prepare_adjacency(adj, n_pad)       # prepared once, outside the jitted forward

    out = gcn_forward(adj_bf, x, w1, b1, w2, b2, tm=TM)
    out = jax.block_until_ready(out)

    ref = reference_forward(adj, x, w1, b1, w2, b2)
    assert out.shape == (N, C)
    max_err = float(jnp.max(jnp.abs(out - ref)))
    assert jnp.allclose(out, ref, atol=2e-2, rtol=2e-2), (
        f"Pallas output mismatch vs reference (max abs err {max_err})"
    )

    print("KERNEL_OK")
</pallas_src>

<mosaic_0001>
module attributes {stable_mosaic.version = 11 : i64} {
  func.func @gcn_layer1_kernel(%arg0: i32, %arg1: memref<128x384xbf16, #tpu.memory_space<vmem>>, %arg2: memref<384x128xbf16, #tpu.memory_space<vmem>>, %arg3: memref<1x128xf32, #tpu.memory_space<vmem>>, %arg4: memref<128x128xbf16, #tpu.memory_space<vmem>>, %arg5: memref<128x128xbf16, #tpu.memory_space<vmem>>) attributes {dimension_semantics = [#tpu.dimension_semantics<parallel>], iteration_bounds = array<i64: 3>, scalar_prefetch = 0 : i64, scratch_operands = 0 : i64, tpu.core_type = #tpu.core_type<tc>, window_params = [{transform_indices = @transform_0, window_bounds = array<i64: 128, 384>}, {pipeline_mode = #tpu.pipeline_mode<synchronous>, transform_indices = @transform_1, window_bounds = array<i64: 384, 128>}, {pipeline_mode = #tpu.pipeline_mode<synchronous>, transform_indices = @transform_2, window_bounds = array<i64: 1, 128>}, {pipeline_mode = #tpu.pipeline_mode<synchronous>, transform_indices = @transform_3, window_bounds = array<i64: 128, 128>}, {transform_indices = @transform_4, window_bounds = array<i64: 128, 128>}]} {
    %c0 = arith.constant 0 : index
    %c0_0 = arith.constant 0 : index
    %0 = vector.load %arg1[%c0, %c0_0] : memref<128x384xbf16, #tpu.memory_space<vmem>>, vector<128x384xbf16>
    %c0_1 = arith.constant 0 : index
    %c0_2 = arith.constant 0 : index
    %1 = vector.load %arg2[%c0_1, %c0_2] : memref<384x128xbf16, #tpu.memory_space<vmem>>, vector<384x128xbf16>
    %cst = arith.constant dense<0.000000e+00> : vector<128x128xf32>
    %2 = tpu.matmul %0, %1, %cst {dimension_numbers = #tpu.dot_dimension_numbers<[1], [0], [0], [1], [0, 0, 1, 1], [], []>} : vector<128x384xbf16>, vector<384x128xbf16>, vector<128x128xf32> -> vector<128x128xf32>
    %c0_3 = arith.constant 0 : index
    %c0_4 = arith.constant 0 : index
    %3 = vector.load %arg3[%c0_3, %c0_4] : memref<1x128xf32, #tpu.memory_space<vmem>>, vector<1x128xf32>
    %4 = vector.broadcast %3 : vector<1x128xf32> to vector<128x128xf32>
    %5 = arith.addf %2, %4 : vector<128x128xf32>
    %cst_5 = arith.constant 0.000000e+00 : f32
    %6 = vector.broadcast %cst_5 : f32 to vector<128x128xf32>
    %7 = arith.maximumf %5, %6 : vector<128x128xf32>
    %8 = arith.truncf %7 : vector<128x128xf32> to vector<128x128xbf16>
    %c0_6 = arith.constant 0 : index
    %c0_7 = arith.constant 0 : index
    %9 = vector.load %arg4[%c0_6, %c0_7] : memref<128x128xbf16, #tpu.memory_space<vmem>>, vector<128x128xbf16>
    %cst_8 = arith.constant dense<0.000000e+00> : vector<128x128xf32>
    %10 = tpu.matmul %8, %9, %cst_8 {dimension_numbers = #tpu.dot_dimension_numbers<[1], [0], [0], [1], [0, 0, 1, 1], [], []>} : vector<128x128xbf16>, vector<128x128xbf16>, vector<128x128xf32> -> vector<128x128xf32>
    %11 = arith.truncf %10 : vector<128x128xf32> to vector<128x128xbf16>
    %c0_9 = arith.constant 0 : index
    %c0_10 = arith.constant 0 : index
    %12 = vector.load %arg5[%c0_9, %c0_10] : memref<128x128xbf16, #tpu.memory_space<vmem>>, vector<128x128xbf16>
    tpu.vector_store %arg5[%c0_9, %c0_10], %11 {strides = array<i32>} : memref<128x128xbf16, #tpu.memory_space<vmem>>, vector<128x128xbf16>,
    return
  }
  func.func @transform_0(%arg0: i32) -> (i32, i32) {
    %c0_i32 = arith.constant 0 : i32
    %c0_i32_0 = arith.constant 0 : i32
    return %arg0, %c0_i32 : i32, i32
  }
  func.func @transform_1(%arg0: i32) -> (i32, i32) {
    %c0_i32 = arith.constant 0 : i32
    %c0_i32_0 = arith.constant 0 : i32
    %c0_i32_1 = arith.constant 0 : i32
    return %c0_i32, %c0_i32_0 : i32, i32
  }
  func.func @transform_2(%arg0: i32) -> (i32, i32) {
    %c0_i32 = arith.constant 0 : i32
    %c0_i32_0 = arith.constant 0 : i32
    %c0_i32_1 = arith.constant 0 : i32
    return %c0_i32, %c0_i32_0 : i32, i32
  }
  func.func @transform_3(%arg0: i32) -> (i32, i32) {
    %c0_i32 = arith.constant 0 : i32
    %c0_i32_0 = arith.constant 0 : i32
    %c0_i32_1 = arith.constant 0 : i32
    return %c0_i32, %c0_i32_0 : i32, i32
  }
  func.func @transform_4(%arg0: i32) -> (i32, i32) {
    %c0_i32 = arith.constant 0 : i32
    %c0_i32_0 = arith.constant 0 : i32
    return %arg0, %c0_i32 : i32, i32
  }
}

module attributes {stable_mosaic.version = 11 : i64} {
  func.func @gcn_layer2_kernel(%arg0: i32, %arg1: memref<128x384xbf16, #tpu.memory_space<vmem>>, %arg2: memref<384x128xbf16, #tpu.memory_space<vmem>>, %arg3: memref<1x128xf32, #tpu.memory_space<vmem>>, %arg4: memref<128x128xf32, #tpu.memory_space<vmem>>) attributes {dimension_semantics = [#tpu.dimension_semantics<parallel>], iteration_bounds = array<i64: 3>, scalar_prefetch = 0 : i64, scratch_operands = 0 : i64, tpu.core_type = #tpu.core_type<tc>, window_params = [{transform_indices = @transform_0, window_bounds = array<i64: 128, 384>}, {pipeline_mode = #tpu.pipeline_mode<synchronous>, transform_indices = @transform_1, window_bounds = array<i64: 384, 128>}, {pipeline_mode = #tpu.pipeline_mode<synchronous>, transform_indices = @transform_2, window_bounds = array<i64: 1, 128>}, {transform_indices = @transform_3, window_bounds = array<i64: 128, 128>}]} {
    %c0 = arith.constant 0 : index
    %c0_0 = arith.constant 0 : index
    %0 = vector.load %arg1[%c0, %c0_0] : memref<128x384xbf16, #tpu.memory_space<vmem>>, vector<128x384xbf16>
    %c0_1 = arith.constant 0 : index
    %c0_2 = arith.constant 0 : index
    %1 = vector.load %arg2[%c0_1, %c0_2] : memref<384x128xbf16, #tpu.memory_space<vmem>>, vector<384x128xbf16>
    %cst = arith.constant dense<0.000000e+00> : vector<128x128xf32>
    %2 = tpu.matmul %0, %1, %cst {dimension_numbers = #tpu.dot_dimension_numbers<[1], [0], [0], [1], [0, 0, 1, 1], [], []>} : vector<128x384xbf16>, vector<384x128xbf16>, vector<128x128xf32> -> vector<128x128xf32>
    %c0_3 = arith.constant 0 : index
    %c0_4 = arith.constant 0 : index
    %3 = vector.load %arg3[%c0_3, %c0_4] : memref<1x128xf32, #tpu.memory_space<vmem>>, vector<1x128xf32>
    %4 = vector.broadcast %3 : vector<1x128xf32> to vector<128x128xf32>
    %5 = arith.addf %2, %4 : vector<128x128xf32>
    %c0_5 = arith.constant 0 : index
    %c0_6 = arith.constant 0 : index
    %6 = vector.load %arg4[%c0_5, %c0_6] : memref<128x128xf32, #tpu.memory_space<vmem>>, vector<128x128xf32>
    tpu.vector_store %arg4[%c0_5, %c0_6], %5 {strides = array<i32>} : memref<128x128xf32, #tpu.memory_space<vmem>>, vector<128x128xf32>,
    return
  }
  func.func @transform_0(%arg0: i32) -> (i32, i32) {
    %c0_i32 = arith.constant 0 : i32
    %c0_i32_0 = arith.constant 0 : i32
    return %arg0, %c0_i32 : i32, i32
  }
  func.func @transform_1(%arg0: i32) -> (i32, i32) {
    %c0_i32 = arith.constant 0 : i32
    %c0_i32_0 = arith.constant 0 : i32
    %c0_i32_1 = arith.constant 0 : i32
    return %c0_i32, %c0_i32_0 : i32, i32
  }
  func.func @transform_2(%arg0: i32) -> (i32, i32) {
    %c0_i32 = arith.constant 0 : i32
    %c0_i32_0 = arith.constant 0 : i32
    %c0_i32_1 = arith.constant 0 : i32
    return %c0_i32, %c0_i32_0 : i32, i32
  }
  func.func @transform_3(%arg0: i32) -> (i32, i32) {
    %c0_i32 = arith.constant 0 : i32
    %c0_i32_0 = arith.constant 0 : i32
    return %arg0, %c0_i32 : i32, i32
  }
}

</mosaic_0001>

<bundles_post_ra>
// kernel: gcn_forward.2
= control target key start
LH: loop header
LB: loop body
LE: loop exit
PB: predicated region body
PF: predicated region fallthrough
CT: control target
= control target key end

     0   :  { %s1313_s15 = smov 0   ;;  %s1511_s0 = inlined_call_operand.vmem [shape: bf16[384,384], index: 0, kind: input, shape index: {}]   ;;  %s1512_s1 = inlined_call_operand.vmem [shape: bf16[384,128], index: 1, kind: input, shape index: {}]   ;;  %s1513_s2 = inlined_call_operand.vmem [shape: f32[1,128], index: 2, kind: input, shape index: {}]   ;;  %s1514_s3 = inlined_call_operand.vmem [shape: bf16[128,128], index: 3, kind: input, shape index: {}]   ;;  %s1515_s4 = inlined_call_operand.vmem [shape: bf16[384,128], index: 4, kind: output, shape index: {}]  }
   0x1 LB: > { %s932_s16 = sadd.s32 4294967295, %s1286_s15   ;;  %p936_p0 = scmp.ge.s32.totalorder %s1286_s15, 1  ;;  %s1286_s15 = sphi %s1313_s15, %s14_s15  }
   0x2   : > { %p164_p1 = scmp.lt.s32.totalorder %s1286_s15, 4 }
   0x4   : > { %p165_p2 = pnand %p936_p0, %p164_p1 }
   0x5   : > { %s937_s9 = sshll.u32 (!%p165_p2), %s932_s16, 4 }
   0x6   : > { %168 = sbr.rel (%p165_p2) target bundleno = 446 (0x1be), region = 36  ;;  %p192_p3 = scmp.lt.s32.totalorder (!%p165_p2), %s937_s9, 47 }
   0xb   : > { %v1198_v0 = vld [vmem:[%s1512_s1 + $0x38] sm:$0xff]  ;;  %v1197_v3 = vld [vmem:[%s1512_s1 + $0x30] sm:$0xff]  ;;  %v1196_v6 = vld [vmem:[%s1512_s1 + $0x28] sm:$0xff]  ;;  %s1517_s9 = smov (!%p192_p3, %s937_s9), 47 }
   0xc   : > { %v1206_v1 = vld [vmem:[%s1512_s1 + $0x78] sm:$0xff]  ;;  %560 = vmatpush.bf16.msra.mxu0 %v1198_v0  ;;  %v1205_v4 = vld [vmem:[%s1512_s1 + $0x70] sm:$0xff]  ;;  %v1204_v7 = vld [vmem:[%s1512_s1 + $0x68] sm:$0xff]  ;;  %s1270_s27 = smul.u32 12, %s1517_s9  ;;  %s940_s14 = sshll.u32 %s1517_s9, 2 }
   0xd   : > { %v1214_v2 = vld [vmem:[%s1512_s1 + $0xb8] sm:$0xff]  ;;  %609 = vmatpush.bf16.msra.mxu1 %v1206_v1  ;;  %v1213_v5 = vld [vmem:[%s1512_s1 + $0xb0] sm:$0xff]  ;;  %v1212_v8 = vld [vmem:[%s1512_s1 + $0xa8] sm:$0xff]  ;;  %s1498_s16 = scalar_lea.vmem %s1515_s4, %s940_s14 }
   0xe   : > { %658 = vmatpush.bf16.msra.mxu2 %v1214_v2  ;;  %v1195_v9 = vld [vmem:[%s1512_s1 + $0x20] sm:$0xff]  ;;  %v1194_v12 = vld [vmem:[%s1512_s1 + $0x18] sm:$0xff]  ;;  %v1193_v15 = vld [vmem:[%s1512_s1 + $0x10] sm:$0xff]  ;;  %s1387_s11 = scalar_lea.vmem %s1511_s0, %s1270_s27 }
   0xf   : > { %v1203_v10 = vld [vmem:[%s1512_s1 + $0x60] sm:$0xff]  ;;  %v1202_v13 = vld [vmem:[%s1512_s1 + $0x58] sm:$0xff]  ;;  %v1201_v16 = vld [vmem:[%s1512_s1 + $0x50] sm:$0xff] }
  0x10   : > { %561 = vmatpush.bf16.msra.mxu0 %v1197_v3  ;;  %v1211_v11 = vld [vmem:[%s1512_s1 + $0xa0] sm:$0xff]  ;;  %v1210_v14 = vld [vmem:[%s1512_s1 + $0x98] sm:$0xff]  ;;  %v1209_v17 = vld [vmem:[%s1512_s1 + $0x90] sm:$0xff] }
  0x11   : > { %610 = vmatpush.bf16.msra.mxu1 %v1205_v4  ;;  %v1192_v18 = vld [vmem:[%s1512_s1 + $0x8] sm:$0xff]  ;;  %v1191_v21 = vld [vmem:[%s1512_s1] sm:$0xff]  ;;  %v945_v26 = vld [vmem:[%s1387_s11 + $0xc] sm:$0xf0] }
  0x12   : > { %659 = vmatpush.bf16.msra.mxu2 %v1213_v5  ;;  %v1200_v19 = vld [vmem:[%s1512_s1 + $0x48] sm:$0xff]  ;;  %v1199_v22 = vld [vmem:[%s1512_s1 + $0x40] sm:$0xff]  ;;  %v1169_v29 = vld [vmem:[%s1387_s11 + $0x10] sm:$0xf0] }
  0x13   : > { %v1208_v20 = vld [vmem:[%s1512_s1 + $0x88] sm:$0xff]  ;;  %v943_v23 = vld [vmem:[%s1387_s11] sm:$0xf]  ;;  %v1167_v25 = vld [vmem:[%s1387_s11 + $0x4] sm:$0xf] }
  0x14   : > { %562 = vmatpush.bf16.msra.mxu0 %v1196_v6  ;;  %v1168_v24 = vld [vmem:[%s1387_s11 + $0x8] sm:$0xf0]  ;;  %v1207_v27 = vld [vmem:[%s1512_s1 + $0x80] sm:$0xff]  ;;  %v951_v28 = vld [vmem:[%s1387_s11 + $0x8] sm:$0xf]  ;;  %v948_v31 = vor.u32 %v1167_v25, %v945_v26 }
  0x15   : > { %611 = vmatpush.bf16.msra.mxu1 %v1204_v7  ;;  %v944_v30 = vor.u32 %v1168_v24, %v943_v23  ;;  %v952_v32 = vor.u32 %v1169_v29, %v951_v28  ;;  %v955_v33 = vld [vmem:[%s1387_s11 + $0x18] sm:$0xf]  ;;  %v1171_v34 = vld [vmem:[%s1387_s11 + $0x20] sm:$0xf0]  ;;  %v1170_v35 = vld [vmem:[%s1387_s11 + $0x1c] sm:$0xf] }
  0x16   : > { %660 = vmatpush.bf16.msra.mxu2 %v1212_v8  ;;  %v957_v36 = vld [vmem:[%s1387_s11 + $0x24] sm:$0xf0]  ;;  %v963_v37 = vld [vmem:[%s1387_s11 + $0x20] sm:$0xf]  ;;  %v1172_v38 = vld [vmem:[%s1387_s11 + $0x28] sm:$0xf0]  ;;  %v956_v39 = vor.u32 %v1171_v34, %v955_v33 }
  0x17   : > { %v960_v40 = vor.u32 %v1170_v35, %v957_v36  ;;  %v964_v41 = vor.u32 %v1172_v38, %v963_v37  ;;  %v967_v42 = vld [vmem:[%s1387_s11 + $0x30] sm:$0xf]  ;;  %v1174_v43 = vld [vmem:[%s1387_s11 + $0x38] sm:$0xf0]  ;;  %v1173_v44 = vld [vmem:[%s1387_s11 + $0x34] sm:$0xf] }
  0x18   : > { %563 = vmatpush.bf16.msra.mxu0 %v1195_v9  ;;  %v969_v45 = vld [vmem:[%s1387_s11 + $0x3c] sm:$0xf0]  ;;  %v975_v46 = vld [vmem:[%s1387_s11 + $0x38] sm:$0xf]  ;;  %v1175_v47 = vld [vmem:[%s1387_s11 + $0x40] sm:$0xf0]  ;;  %v968_v48 = vor.u32 %v1174_v43, %v967_v42 }
  0x19   : > { %612 = vmatpush.bf16.msra.mxu1 %v1203_v10  ;;  %v972_v49 = vor.u32 %v1173_v44, %v969_v45  ;;  %v976_v50 = vor.u32 %v1175_v47, %v975_v46  ;;  %v979_v51 = vld [vmem:[%s1387_s11 + $0x48] sm:$0xf]  ;;  %v1177_v52 = vld [vmem:[%s1387_s11 + $0x50] sm:$0xf0]  ;;  %v1176_v53 = vld [vmem:[%s1387_s11 + $0x4c] sm:$0xf] }
  0x1a   : > { %661 = vmatpush.bf16.msra.mxu2 %v1211_v11  ;;  %v981_v54 = vld [vmem:[%s1387_s11 + $0x54] sm:$0xf0]  ;;  %v987_v55 = vld [vmem:[%s1387_s11 + $0x50] sm:$0xf]  ;;  %v1178_v56 = vld [vmem:[%s1387_s11 + $0x58] sm:$0xf0]  ;;  %v980_v57 = vor.u32 %v1177_v52, %v979_v51 }
  0x1b   : > { %v984_v58 = vor.u32 %v1176_v53, %v981_v54  ;;  %v988_v59 = vor.u32 %v1178_v56, %v987_v55  ;;  %v991_v60 = vld [vmem:[%s1387_s11 + $0x60] sm:$0xf]  ;;  %v1180_v61 = vld [vmem:[%s1387_s11 + $0x68] sm:$0xf0]  ;;  %v1179_v62 = vld [vmem:[%s1387_s11 + $0x64] sm:$0xf] }
  0x1c   : > { %564 = vmatpush.bf16.msra.mxu0 %v1194_v12  ;;  %v993_v63 = vld [vmem:[%s1387_s11 + $0x6c] sm:$0xf0]  ;;  %v999_v0 = vld [vmem:[%s1387_s11 + $0x68] sm:$0xf]  ;;  %v1181_v1 = vld [vmem:[%s1387_s11 + $0x70] sm:$0xf0]  ;;  %v992_v2 = vor.u32 %v1180_v61, %v991_v60 }
  0x1d   : > { %613 = vmatpush.bf16.msra.mxu1 %v1202_v13  ;;  %v996_v3 = vor.u32 %v1179_v62, %v993_v63  ;;  %v1000_v4 = vor.u32 %v1181_v1, %v999_v0  ;;  %v1003_v5 = vld [vmem:[%s1387_s11 + $0x78] sm:$0xf]  ;;  %v1183_v6 = vld [vmem:[%s1387_s11 + $0x80] sm:$0xf0]  ;;  %v1182_v7 = vld [vmem:[%s1387_s11 + $0x7c] sm:$0xf] }
  0x1e   : > { %662 = vmatpush.bf16.msra.mxu2 %v1210_v14  ;;  %v1005_v8 = vld [vmem:[%s1387_s11 + $0x84] sm:$0xf0]  ;;  %v1011_v9 = vld [vmem:[%s1387_s11 + $0x80] sm:$0xf]  ;;  %v1184_v10 = vld [vmem:[%s1387_s11 + $0x88] sm:$0xf0]  ;;  %v1004_v11 = vor.u32 %v1183_v6, %v1003_v5 }
  0x1f   : > { %v1008_v12 = vor.u32 %v1182_v7, %v1005_v8  ;;  %v1012_v13 = vor.u32 %v1184_v10, %v1011_v9  ;;  %v1222_v14 = vld [vmem:[%s1514_s3 + $0x38] sm:$0xff]  ;;  %v1219_v26 = vld [vmem:[%s1514_s3 + $0x20] sm:$0xff]  ;;  %v1217_v28 = vld [vmem:[%s1514_s3 + $0x10] sm:$0xff] }
  0x20   : > { %565 = vmatpush.bf16.msra.mxu0 %v1193_v15  ;;  %795 = vmatpush.bf16.msra.mxu3 %v1222_v14  ;;  %v1221_v15 = vld [vmem:[%s1514_s3 + $0x30] sm:$0xff]  ;;  %v1027_v29 = vld [vmem:[%s1387_s11 + $0xa8] sm:$0xf]  ;;  %v1190_v34 = vld [vmem:[%s1387_s11 + $0xb8] sm:$0xf0] }
  0x21   : > { %614 = vmatpush.bf16.msra.mxu1 %v1201_v16  ;;  %v1220_v16 = vld [vmem:[%s1514_s3 + $0x28] sm:$0xff]  ;;  %v1035_v33 = vld [vmem:[%s1387_s11 + $0xb0] sm:$0xf]  ;;  %v1476_v42 = vld [vmem:[%s1513_s2] ss:$0 sm:$0xff] }
  0x22   : > { %663 = vmatpush.bf16.msra.mxu2 %v1209_v17  ;;  %v1015_v17 = vld [vmem:[%s1387_s11 + $0x90] sm:$0xf]  ;;  %v1216_v35 = vld [vmem:[%s1514_s3 + $0x8] sm:$0xff]  ;;  %v1036_v38 = vor.u32 %v1190_v34, %v1035_v33 }
  0x24   : > { %566 = vmatpush.bf16.msra.mxu0 %v1192_v18  ;;  %796 = vmatpush.bf16.msra.mxu3 %v1221_v15  ;;  %v1186_v18 = vld [vmem:[%s1387_s11 + $0x98] sm:$0xf0] }
  0x25   : > { %615 = vmatpush.bf16.msra.mxu1 %v1200_v19  ;;  %v1185_v19 = vld [vmem:[%s1387_s11 + $0x94] sm:$0xf]  ;;  %v1016_v23 = vor.u32 %v1186_v18, %v1015_v17 }
  0x26   : > { %664 = vmatpush.bf16.msra.mxu2 %v1208_v20  ;;  %v1017_v20 = vld [vmem:[%s1387_s11 + $0x9c] sm:$0xf0] }
  0x27   : > { %v1020_v24 = vor.u32 %v1185_v19, %v1017_v20 }
  0x28   : > { %567 = vmatpush.bf16.msra.mxu0 %v1191_v21  ;;  %v1023_v21 = vld [vmem:[%s1387_s11 + $0x98] sm:$0xf]  ;;  %797 = vmatpush.bf16.msra.mxu3 %v1220_v16 }
  0x29   : > { %616 = vmatpush.bf16.msra.mxu1 %v1199_v22  ;;  %v1187_v22 = vld [vmem:[%s1387_s11 + $0xa0] sm:$0xf0] }
  0x2a   : > { %665 = vmatpush.bf16.msra.mxu2 %v1207_v27  ;;  %v1024_v25 = vor.u32 %v1187_v22, %v1023_v21  ;;  %v1218_v27 = vld [vmem:[%s1514_s3 + $0x18] sm:$0xff] }
  0x2b   : > { %568 = vmatmul.bf16.vlgmr.msra.gmra.mxu0 %v944_v30  ;;  %v1189_v30 = vld [vmem:[%s1387_s11 + $0xb0] sm:$0xf0] }
  0x2c   : > { %617 = vmatmul.bf16.vlgmr.msra.gmra.mxu1 %v948_v31  ;;  %798 = vmatpush.bf16.msra.mxu3 %v1219_v26  ;;  %v1188_v31 = vld [vmem:[%s1387_s11 + $0xac] sm:$0xf]  ;;  %v1028_v36 = vor.u32 %v1189_v30, %v1027_v29 }
  0x2d   : > { %666 = vmatmul.bf16.vlgmr.msra.gmra.mxu2 %v952_v32  ;;  %v1029_v32 = vld [vmem:[%s1387_s11 + $0xb4] sm:$0xf0] }
  0x2e   : > { %v1032_v37 = vor.u32 %v1188_v31, %v1029_v32 }
  0x30   : > { %799 = vmatpush.bf16.msra.mxu3 %v1218_v27 }
  0x34   : > { %800 = vmatpush.bf16.msra.mxu3 %v1217_v28 }
  0x38   : > { %801 = vmatpush.bf16.msra.mxu3 %v1216_v35 }
  0x3b   : > { %573 = vmatmul.bf16.gmra.mxu0 %v956_v39  ;;  %v1215_v39 = vld [vmem:[%s1514_s3] sm:$0xff] }
  0x3c   : > { %622 = vmatmul.bf16.gmra.mxu1 %v960_v40  ;;  %802 = vmatpush.bf16.msra.mxu3 %v1215_v39 }
  0x3d   : > { %671 = vmatmul.bf16.gmra.mxu2 %v964_v41 }
  0x4b   : > { %578 = vmatmul.bf16.gmra.mxu0 %v968_v48 }
  0x4c   : > { %627 = vmatmul.bf16.gmra.mxu1 %v972_v49 }
  0x4d   : > { %676 = vmatmul.bf16.gmra.mxu2 %v976_v50 }
  0x5b   : > { %583 = vmatmul.bf16.gmra.mxu0 %v980_v57 }
  0x5c   : > { %632 = vmatmul.bf16.gmra.mxu1 %v984_v58 }
  0x5d   : > { %681 = vmatmul.bf16.gmra.mxu2 %v988_v59 }
  0x6b   : > { %588 = vmatmul.bf16.gmra.mxu0 %v992_v2 }
  0x6c   : > { %637 = vmatmul.bf16.gmra.mxu1 %v996_v3 }
  0x6d   : > { %686 = vmatmul.bf16.gmra.mxu2 %v1000_v4 }
  0x7b   : > { %593 = vmatmul.bf16.gmra.mxu0 %v1004_v11 }
  0x7c   : > { %642 = vmatmul.bf16.gmra.mxu1 %v1008_v12 }
  0x7d   : > { %691 = vmatmul.bf16.gmra.mxu2 %v1012_v13 }
  0x8b   : > { %598 = vmatmul.bf16.gmra.mxu0 %v1016_v23 }
  0x8c   : > { %647 = vmatmul.bf16.gmra.mxu1 %v1020_v24 }
  0x8d   : > { %696 = vmatmul.bf16.gmra.mxu2 %v1024_v25 }
  0x9b   : > { %603 = vmatmul.bf16.gmra.mxu0 %v1028_v36 }
  0x9c   : > { %652 = vmatmul.bf16.gmra.mxu1 %v1032_v37 }
  0x9d   : > { %701 = vmatmul.bf16.gmra.mxu2 %v1036_v38 }
  0xa8   : > { %v569_v40 = vpop.f32.mrf.mxu0 }
  0xa9   : > { %v618_v41 = vpop.f32.mrf.mxu1  ;;  %v570_v43 = vadd.f32 %v1476_v42, %v569_v40 }
  0xab   : > { %v619_v47 = vadd.f32 %v618_v41, %v570_v43 }
  0xb0   : > { %v667_v44 = vpop.f32.mrf.mxu2  ;;  %v571_v45 = vpop.f32.mrf.mxu0 }
  0xb1   : > { %v620_v46 = vpop.f32.mrf.mxu1  ;;  %v572_v48 = vadd.f32 %v1476_v42, %v571_v45  ;;  %v668_v49 = vadd.f32 %v667_v44, %v619_v47 }
  0xb3   : > { %v621_v50 = vadd.f32 %v620_v46, %v572_v48  ;;  %v707_v55 = vmax.f32 %v668_v49, 0.0 }
  0xb8   : > { %v669_v51 = vpop.f32.mrf.mxu2  ;;  %v574_v53 = vpop.f32.mrf.mxu0 }
  0xb9   : > { %v670_v52 = vadd.f32 %v669_v51, %v621_v50  ;;  %v623_v54 = vpop.f32.mrf.mxu1  ;;  %v575_v58 = vadd.f32 %v1476_v42, %v574_v53 }
  0xbb   : > { %v708_v56 = vmax.f32 %v670_v52, 0.0  ;;  %v624_v62 = vadd.f32 %v623_v54, %v575_v58 }
  0xbd   : > { %v723_v57 = vpack.c.bf16 %v708_v56, %v707_v55 }
  0xbf   : > { %803 = vmatmul.bf16.vlgmr.msra.gmra.mxu3 %v723_v57 }
  0xc0   : > { %v672_v59 = vpop.f32.mrf.mxu2  ;;  %v576_v60 = vpop.f32.mrf.mxu0 }
  0xc1   : > { %v625_v61 = vpop.f32.mrf.mxu1  ;;  %v577_v63 = vadd.f32 %v1476_v42, %v576_v60  ;;  %v673_v0 = vadd.f32 %v672_v59, %v624_v62 }
  0xc3   : > { %v626_v1 = vadd.f32 %v625_v61, %v577_v63  ;;  %v709_v6 = vmax.f32 %v673_v0, 0.0 }
  0xc8   : > { %v674_v2 = vpop.f32.mrf.mxu2  ;;  %v579_v4 = vpop.f32.mrf.mxu0 }
  0xc9   : > { %v675_v3 = vadd.f32 %v674_v2, %v626_v1  ;;  %v628_v5 = vpop.f32.mrf.mxu1  ;;  %v580_v9 = vadd.f32 %v1476_v42, %v579_v4 }
  0xcb   : > { %v710_v7 = vmax.f32 %v675_v3, 0.0  ;;  %v629_v13 = vadd.f32 %v628_v5, %v580_v9 }
  0xcd   : > { %v724_v8 = vpack.c.bf16 %v710_v7, %v709_v6 }
  0xcf   : > { %808 = vmatmul.bf16.gmra.mxu3 %v724_v8 }
  0xd0   : > { %v677_v10 = vpop.f32.mrf.mxu2  ;;  %v581_v11 = vpop.f32.mrf.mxu0 }
  0xd1   : > { %v630_v12 = vpop.f32.mrf.mxu1  ;;  %v582_v14 = vadd.f32 %v1476_v42, %v581_v11  ;;  %v678_v15 = vadd.f32 %v677_v10, %v629_v13 }
  0xd3   : > { %v631_v16 = vadd.f32 %v630_v12, %v582_v14  ;;  %v711_v21 = vmax.f32 %v678_v15, 0.0 }
  0xd8   : > { %v679_v17 = vpop.f32.mrf.mxu2  ;;  %v584_v19 = vpop.f32.mrf.mxu0 }
  0xd9   : > { %v680_v18 = vadd.f32 %v679_v17, %v631_v16  ;;  %v633_v20 = vpop.f32.mrf.mxu1  ;;  %v585_v24 = vadd.f32 %v1476_v42, %v584_v19 }
  0xdb   : > { %v712_v22 = vmax.f32 %v680_v18, 0.0  ;;  %v634_v28 = vadd.f32 %v633_v20, %v585_v24 }
  0xdd   : > { %v725_v23 = vpack.c.bf16 %v712_v22, %v711_v21 }
  0xdf   : > { %813 = vmatmul.bf16.gmra.mxu3 %v725_v23 }
  0xe0   : > { %v682_v25 = vpop.f32.mrf.mxu2  ;;  %v586_v26 = vpop.f32.mrf.mxu0 }
  0xe1   : > { %v635_v27 = vpop.f32.mrf.mxu1  ;;  %v587_v29 = vadd.f32 %v1476_v42, %v586_v26  ;;  %v683_v30 = vadd.f32 %v682_v25, %v634_v28 }
  0xe3   : > { %v636_v31 = vadd.f32 %v635_v27, %v587_v29  ;;  %v713_v36 = vmax.f32 %v683_v30, 0.0 }
  0xe8   : > { %v684_v32 = vpop.f32.mrf.mxu2  ;;  %v589_v34 = vpop.f32.mrf.mxu0 }
  0xe9   : > { %v685_v33 = vadd.f32 %v684_v32, %v636_v31  ;;  %v638_v35 = vpop.f32.mrf.mxu1  ;;  %v590_v39 = vadd.f32 %v1476_v42, %v589_v34 }
  0xeb   : > { %v714_v37 = vmax.f32 %v685_v33, 0.0  ;;  %v639_v44 = vadd.f32 %v638_v35, %v590_v39 }
  0xed   : > { %v726_v38 = vpack.c.bf16 %v714_v37, %v713_v36 }
  0xef   : > { %818 = vmatmul.bf16.gmra.mxu3 %v726_v38 }
  0xf0   : > { %v687_v40 = vpop.f32.mrf.mxu2  ;;  %v591_v41 = vpop.f32.mrf.mxu0 }
  0xf1   : > { %v640_v43 = vpop.f32.mrf.mxu1  ;;  %v592_v45 = vadd.f32 %v1476_v42, %v591_v41  ;;  %v688_v46 = vadd.f32 %v687_v40, %v639_v44 }
  0xf3   : > { %v641_v47 = vadd.f32 %v640_v43, %v592_v45  ;;  %v715_v52 = vmax.f32 %v688_v46, 0.0 }
  0xf8   : > { %v689_v48 = vpop.f32.mrf.mxu2  ;;  %v594_v50 = vpop.f32.mrf.mxu0 }
  0xf9   : > { %v690_v49 = vadd.f32 %v689_v48, %v641_v47  ;;  %v643_v51 = vpop.f32.mrf.mxu1  ;;  %v595_v55 = vadd.f32 %v1476_v42, %v594_v50 }
  0xfb   : > { %v716_v53 = vmax.f32 %v690_v49, 0.0  ;;  %v644_v59 = vadd.f32 %v643_v51, %v595_v55 }
  0xfd   : > { %v727_v54 = vpack.c.bf16 %v716_v53, %v715_v52 }
  0xff   : > { %823 = vmatmul.bf16.gmra.mxu3 %v727_v54 }
 0x100   : > { %v692_v56 = vpop.f32.mrf.mxu2  ;;  %v596_v57 = vpop.f32.mrf.mxu0 }
 0x101   : > { %v645_v58 = vpop.f32.mrf.mxu1  ;;  %v597_v60 = vadd.f32 %v1476_v42, %v596_v57  ;;  %v693_v61 = vadd.f32 %v692_v56, %v644_v59 }
 0x103   : > { %v646_v62 = vadd.f32 %v645_v58, %v597_v60  ;;  %v717_v3 = vmax.f32 %v693_v61, 0.0 }
 0x108   : > { %v694_v63 = vpop.f32.mrf.mxu2  ;;  %v599_v1 = vpop.f32.mrf.mxu0 }
 0x109   : > { %v695_v0 = vadd.f32 %v694_v63, %v646_v62  ;;  %v648_v2 = vpop.f32.mrf.mxu1  ;;  %v600_v6 = vadd.f32 %v1476_v42, %v599_v1 }
 0x10b   : > { %v718_v4 = vmax.f32 %v695_v0, 0.0  ;;  %v649_v10 = vadd.f32 %v648_v2, %v600_v6 }
 0x10d   : > { %v728_v5 = vpack.c.bf16 %v718_v4, %v717_v3 }
 0x10f   : > { %828 = vmatmul.bf16.gmra.mxu3 %v728_v5 }
 0x110   : > { %v697_v7 = vpop.f32.mrf.mxu2  ;;  %v601_v8 = vpop.f32.mrf.mxu0 }
 0x111   : > { %v650_v9 = vpop.f32.mrf.mxu1  ;;  %v602_v11 = vadd.f32 %v1476_v42, %v601_v8  ;;  %v698_v12 = vadd.f32 %v697_v7, %v649_v10 }
 0x113   : > { %v651_v13 = vadd.f32 %v650_v9, %v602_v11  ;;  %v719_v17 = vmax.f32 %v698_v12, 0.0 }
 0x118   : > { %v699_v14 = vpop.f32.mrf.mxu2  ;;  %v604_v16 = vpop.f32.mrf.mxu0 }
 0x119   : > { %v700_v15 = vadd.f32 %v699_v14, %v651_v13  ;;  %v653_v19 = vpop.f32.mrf.mxu1  ;;  %v605_v21 = vadd.f32 %v1476_v42, %v604_v16 }
 0x11b   : > { %v720_v18 = vmax.f32 %v700_v15, 0.0  ;;  %v654_v24 = vadd.f32 %v653_v19, %v605_v21 }
 0x11d   : > { %v729_v20 = vpack.c.bf16 %v720_v18, %v719_v17 }
 0x11f   : > { %833 = vmatmul.bf16.gmra.mxu3 %v729_v20 }
 0x120   : > { %v702_v22 = vpop.f32.mrf.mxu2  ;;  %v606_v23 = vpop.f32.mrf.mxu0 }
 0x121   : > { %v607_v25 = vadd.f32 %v1476_v42, %v606_v23  ;;  %v655_v26 = vpop.f32.mrf.mxu1  ;;  %v703_v27 = vadd.f32 %v702_v22, %v654_v24 }
 0x123   : > { %v656_v28 = vadd.f32 %v655_v26, %v607_v25  ;;  %v721_v31 = vmax.f32 %v703_v27, 0.0 }
 0x128   : > { %v704_v29 = vpop.f32.mrf.mxu2 }
 0x129   : > { %v705_v30 = vadd.f32 %v704_v29, %v656_v28 }
 0x12b   : > { %v722_v32 = vmax.f32 %v705_v30, 0.0 }
 0x12d   : > { %v730_v33 = vpack.c.bf16 %v722_v32, %v721_v31 }
 0x12f   : > { %838 = vmatmul.bf16.gmra.mxu3 %v730_v33 }
 0x142   : > { %v804_v34 = vpop.f32.mrf.mxu3 }
 0x14a   : > { %v806_v42 = vpop.f32.mrf.mxu3 }
 0x14b   : > { %v1226_v35 = vpack.c.bf16 %v806_v42, %v804_v34 }
 0x14d   : > { %1227 = vst [vmem:[%s1498_s16] sm:$0xff] %v1226_v35  }
 0x152   : > { %v809_v36 = vpop.f32.mrf.mxu3 }
 0x15a   : > { %v811_v37 = vpop.f32.mrf.mxu3 }
 0x15b   : > { %v1231_v38 = vpack.c.bf16 %v811_v37, %v809_v36 }
 0x15d   : > { %1263 = vst [vmem:[%s1498_s16 + $0x8] sm:$0xff] %v1231_v38  }
 0x162   : > { %v814_v39 = vpop.f32.mrf.mxu3 }
 0x16a   : > { %v816_v40 = vpop.f32.mrf.mxu3 }
 0x16b   : > { %v1236_v41 = vpack.c.bf16 %v816_v40, %v814_v39 }
 0x16d   : > { %1264 = vst [vmem:[%s1498_s16 + $0x10] sm:$0xff] %v1236_v41  }
 0x172   : > { %v819_v43 = vpop.f32.mrf.mxu3 }
 0x17a   : > { %v821_v44 = vpop.f32.mrf.mxu3 }
 0x17b   : > { %v1241_v45 = vpack.c.bf16 %v821_v44, %v819_v43 }
 0x17d   : > { %1265 = vst [vmem:[%s1498_s16 + $0x18] sm:$0xff] %v1241_v45  }
 0x182   : > { %v824_v46 = vpop.f32.mrf.mxu3 }
 0x18a   : > { %v826_v47 = vpop.f32.mrf.mxu3 }
 0x18b   : > { %v1246_v48 = vpack.c.bf16 %v826_v47, %v824_v46 }
 0x18d   : > { %1266 = vst [vmem:[%s1498_s16 + $0x20] sm:$0xff] %v1246_v48  }
 0x192   : > { %v829_v49 = vpop.f32.mrf.mxu3 }
 0x19a   : > { %v831_v50 = vpop.f32.mrf.mxu3 }
 0x19b   : > { %v1251_v51 = vpack.c.bf16 %v831_v50, %v829_v49 }
 0x19d   : > { %1267 = vst [vmem:[%s1498_s16 + $0x28] sm:$0xff] %v1251_v51  }
 0x1a2   : > { %v834_v52 = vpop.f32.mrf.mxu3 }
 0x1aa   : > { %v836_v53 = vpop.f32.mrf.mxu3 }
 0x1ab   : > { %v1256_v54 = vpack.c.bf16 %v836_v53, %v834_v52 }
 0x1ad   : > { %1268 = vst [vmem:[%s1498_s16 + $0x30] sm:$0xff] %v1256_v54  }
 0x1b2   : > { %v839_v55 = vpop.f32.mrf.mxu3 }
 0x1ba   : > { %v841_v56 = vpop.f32.mrf.mxu3 }
 0x1bb   : > { %v1261_v57 = vpack.c.bf16 %v841_v56, %v839_v55 }
 0x1bd   : > { %1269 = vst [vmem:[%s1498_s16 + $0x38] sm:$0xff] %v1261_v57  }
 0x1be PF: > { %s14_s15 = sadd.s32 1, %s1286_s15  }
 0x1bf   : > { %p11_p4 = scmp.ge.s32.totalorder %s14_s15, 5  }
 0x1c1   :  { %13 = sbr.rel (!%p11_p4) target bundleno = 1 (0x1), region = 66 }

// kernel: gcn_forward.3
= control target key start
LH: loop header
LB: loop body
LE: loop exit
PB: predicated region body
PF: predicated region fallthrough
CT: control target
= control target key end

     0   :  { %s1065_s12 = smov 0   ;;  %s1307_s0 = inlined_call_operand.vmem [shape: bf16[384,384], index: 0, kind: input, shape index: {}]   ;;  %s1308_s1 = inlined_call_operand.vmem [shape: bf16[384,128], index: 1, kind: input, shape index: {}]   ;;  %s1309_s2 = inlined_call_operand.vmem [shape: f32[1,128], index: 2, kind: input, shape index: {}]   ;;  %s1310_s3 = inlined_call_operand.vmem [shape: f32[384,128], index: 3, kind: output, shape index: {}]  }
   0x1 LB: > { %s752_s13 = sadd.s32 4294967295, %s1043_s12   ;;  %p756_p0 = scmp.ge.s32.totalorder %s1043_s12, 1  ;;  %s1043_s12 = sphi %s1065_s12, %s13_s12  }
   0x2   : > { %p139_p1 = scmp.lt.s32.totalorder %s1043_s12, 4 }
   0x4   : > { %p140_p2 = pnand %p756_p0, %p139_p1 }
   0x5   : > { %s757_s5 = sshll.u32 (!%p140_p2), %s752_s13, 4 }
   0x6   : > { %143 = sbr.rel (%p140_p2) target bundleno = 268 (0x10c), region = 32  ;;  %p165_p3 = scmp.lt.s32.totalorder (!%p140_p2), %s757_s5, 47 }
   0xb   : > { %v986_v0 = vld [vmem:[%s1308_s1 + $0x38] sm:$0xff]  ;;  %v985_v3 = vld [vmem:[%s1308_s1 + $0x30] sm:$0xff]  ;;  %v984_v6 = vld [vmem:[%s1308_s1 + $0x28] sm:$0xff]  ;;  %s1312_s5 = smov (!%p165_p3, %s757_s5), 47 }
   0xc   : > { %v1079_v1 = vld [vmem:[%s1308_s1 + $0x78] sm:$0xff]  ;;  %533 = vmatpush.bf16.msra.mxu0 %v986_v0  ;;  %1003 = vmatpush.bf16.msra.mxu3 %v986_v0  ;;  %v1094_v4 = vld [vmem:[%s1308_s1 + $0x70] sm:$0xff]  ;;  %v1109_v7 = vld [vmem:[%s1308_s1 + $0x68] sm:$0xff]  ;;  %s1027_s21 = smul.u32 12, %s1312_s5  ;;  %s760_s18 = sshll.u32 %s1312_s5, 3 }
   0xd   : > { %v1084_v2 = vld [vmem:[%s1308_s1 + $0xb8] sm:$0xff]  ;;  %582 = vmatpush.bf16.msra.mxu1 %v1079_v1  ;;  %v1099_v5 = vld [vmem:[%s1308_s1 + $0xb0] sm:$0xff]  ;;  %v1114_v8 = vld [vmem:[%s1308_s1 + $0xa8] sm:$0xff] }
   0xe   : > { %631 = vmatpush.bf16.msra.mxu2 %v1084_v2  ;;  %v983_v9 = vld [vmem:[%s1308_s1 + $0x20] sm:$0xff]  ;;  %v982_v12 = vld [vmem:[%s1308_s1 + $0x18] sm:$0xff]  ;;  %v981_v15 = vld [vmem:[%s1308_s1 + $0x10] sm:$0xff]  ;;  %s1165_s30 = scalar_lea.vmem %s1307_s0, %s1027_s21  ;;  %s1261_s21 = scalar_lea.vmem %s1310_s3, %s760_s18 }
   0xf   : > { %v1124_v10 = vld [vmem:[%s1308_s1 + $0x60] sm:$0xff]  ;;  %v990_v13 = vld [vmem:[%s1308_s1 + $0x58] sm:$0xff]  ;;  %v989_v16 = vld [vmem:[%s1308_s1 + $0x50] sm:$0xff] }
  0x10   : > { %534 = vmatpush.bf16.msra.mxu0 %v985_v3  ;;  %1004 = vmatpush.bf16.msra.mxu3 %v985_v3  ;;  %v1129_v11 = vld [vmem:[%s1308_s1 + $0xa0] sm:$0xff]  ;;  %v1144_v14 = vld [vmem:[%s1308_s1 + $0x98] sm:$0xff]  ;;  %v1157_v17 = vld [vmem:[%s1308_s1 + $0x90] sm:$0xff] }
  0x11   : > { %583 = vmatpush.bf16.msra.mxu1 %v1094_v4  ;;  %v980_v18 = vld [vmem:[%s1308_s1 + $0x8] sm:$0xff]  ;;  %v979_v21 = vld [vmem:[%s1308_s1] sm:$0xff]  ;;  %v835_v26 = vld [vmem:[%s1165_s30 + $0x90] sm:$0xf] }
  0x12   : > { %632 = vmatpush.bf16.msra.mxu2 %v1099_v5  ;;  %v988_v19 = vld [vmem:[%s1308_s1 + $0x48] sm:$0xff]  ;;  %v987_v22 = vld [vmem:[%s1308_s1 + $0x40] sm:$0xff]  ;;  %v974_v27 = vld [vmem:[%s1165_s30 + $0x98] sm:$0xf0] }
  0x13   : > { %v1174_v20 = vld [vmem:[%s1308_s1 + $0x88] sm:$0xff]  ;;  %v1185_v23 = vld [vmem:[%s1308_s1 + $0x80] sm:$0xff]  ;;  %v765_v29 = vld [vmem:[%s1165_s30 + $0xc] sm:$0xf0]  ;;  %v836_v33 = vor.u32 %v974_v27, %v835_v26 }
  0x14   : > { %535 = vmatpush.bf16.msra.mxu0 %v984_v6  ;;  %1005 = vmatpush.bf16.msra.mxu3 %v984_v6  ;;  %v763_v24 = vld [vmem:[%s1165_s30] sm:$0xf]  ;;  %v956_v25 = vld [vmem:[%s1165_s30 + $0x8] sm:$0xf0]  ;;  %v955_v28 = vld [vmem:[%s1165_s30 + $0x4] sm:$0xf] }
  0x15   : > { %584 = vmatpush.bf16.msra.mxu1 %v1109_v7  ;;  %v771_v30 = vld [vmem:[%s1165_s30 + $0x8] sm:$0xf]  ;;  %v957_v31 = vld [vmem:[%s1165_s30 + $0x10] sm:$0xf0]  ;;  %v764_v32 = vor.u32 %v956_v25, %v763_v24  ;;  %v768_v34 = vor.u32 %v955_v28, %v765_v29  ;;  %v775_v36 = vld [vmem:[%s1165_s30 + $0x18] sm:$0xf] }
  0x16   : > { %633 = vmatpush.bf16.msra.mxu2 %v1114_v8  ;;  %v772_v35 = vor.u32 %v957_v31, %v771_v30  ;;  %v959_v37 = vld [vmem:[%s1165_s30 + $0x20] sm:$0xf0]  ;;  %v847_v38 = vld [vmem:[%s1165_s30 + $0xa8] sm:$0xf]  ;;  %v977_v39 = vld [vmem:[%s1165_s30 + $0xb0] sm:$0xf0] }
  0x17   : > { %v958_v40 = vld [vmem:[%s1165_s30 + $0x1c] sm:$0xf]  ;;  %v777_v41 = vld [vmem:[%s1165_s30 + $0x24] sm:$0xf0]  ;;  %v783_v42 = vld [vmem:[%s1165_s30 + $0x20] sm:$0xf]  ;;  %v776_v44 = vor.u32 %v959_v37, %v775_v36  ;;  %v848_v45 = vor.u32 %v977_v39, %v847_v38 }
  0x18   : > { %536 = vmatpush.bf16.msra.mxu0 %v983_v9  ;;  %1006 = vmatpush.bf16.msra.mxu3 %v983_v9  ;;  %v960_v43 = vld [vmem:[%s1165_s30 + $0x28] sm:$0xf0]  ;;  %v780_v46 = vor.u32 %v958_v40, %v777_v41  ;;  %v787_v48 = vld [vmem:[%s1165_s30 + $0x30] sm:$0xf]  ;;  %v962_v49 = vld [vmem:[%s1165_s30 + $0x38] sm:$0xf0] }
  0x19   : > { %585 = vmatpush.bf16.msra.mxu1 %v1124_v10  ;;  %v784_v47 = vor.u32 %v960_v43, %v783_v42  ;;  %v961_v50 = vld [vmem:[%s1165_s30 + $0x34] sm:$0xf]  ;;  %v837_v52 = vld [vmem:[%s1165_s30 + $0x9c] sm:$0xf0]  ;;  %v795_v54 = vld [vmem:[%s1165_s30 + $0x38] sm:$0xf]  ;;  %v788_v56 = vor.u32 %v962_v49, %v787_v48 }
  0x1a   : > { %634 = vmatpush.bf16.msra.mxu2 %v1129_v11  ;;  %v973_v51 = vld [vmem:[%s1165_s30 + $0x94] sm:$0xf]  ;;  %v789_v53 = vld [vmem:[%s1165_s30 + $0x3c] sm:$0xf0]  ;;  %v963_v55 = vld [vmem:[%s1165_s30 + $0x40] sm:$0xf0] }
  0x1b   : > { %v840_v57 = vor.u32 %v973_v51, %v837_v52  ;;  %v792_v58 = vor.u32 %v961_v50, %v789_v53  ;;  %v796_v59 = vor.u32 %v963_v55, %v795_v54  ;;  %v799_v60 = vld [vmem:[%s1165_s30 + $0x48] sm:$0xf]  ;;  %v965_v61 = vld [vmem:[%s1165_s30 + $0x50] sm:$0xf0]  ;;  %v964_v62 = vld [vmem:[%s1165_s30 + $0x4c] sm:$0xf] }
  0x1c   : > { %537 = vmatpush.bf16.msra.mxu0 %v982_v12  ;;  %1007 = vmatpush.bf16.msra.mxu3 %v982_v12  ;;  %v976_v63 = vld [vmem:[%s1165_s30 + $0xac] sm:$0xf]  ;;  %v849_v0 = vld [vmem:[%s1165_s30 + $0xb4] sm:$0xf0]  ;;  %v966_v3 = vld [vmem:[%s1165_s30 + $0x58] sm:$0xf0] }
  0x1d   : > { %586 = vmatpush.bf16.msra.mxu1 %v990_v13  ;;  %v852_v6 = vor.u32 %v976_v63, %v849_v0  ;;  %v968_v9 = vld [vmem:[%s1165_s30 + $0x68] sm:$0xf0]  ;;  %v975_v12 = vld [vmem:[%s1165_s30 + $0xa0] sm:$0xf0]  ;;  %v855_v24 = vld [vmem:[%s1165_s30 + $0xb0] sm:$0xf] }
  0x1e   : > { %635 = vmatpush.bf16.msra.mxu2 %v1144_v14  ;;  %v825_v25 = vld [vmem:[%s1165_s30 + $0x84] sm:$0xf0]  ;;  %v831_v26 = vld [vmem:[%s1165_s30 + $0x80] sm:$0xf]  ;;  %v972_v27 = vld [vmem:[%s1165_s30 + $0x88] sm:$0xf0] }
  0x1f   : > { %v832_v31 = vor.u32 %v972_v27, %v831_v26 }
  0x20   : > { %538 = vmatpush.bf16.msra.mxu0 %v981_v15  ;;  %1008 = vmatpush.bf16.msra.mxu3 %v981_v15  ;;  %v969_v15 = vld [vmem:[%s1165_s30 + $0x70] sm:$0xf0] }
  0x21   : > { %587 = vmatpush.bf16.msra.mxu1 %v989_v16 }
  0x22   : > { %636 = vmatpush.bf16.msra.mxu2 %v1157_v17 }
  0x24   : > { %539 = vmatpush.bf16.msra.mxu0 %v980_v18  ;;  %1009 = vmatpush.bf16.msra.mxu3 %v980_v18 }
  0x25   : > { %588 = vmatpush.bf16.msra.mxu1 %v988_v19 }
  0x26   : > { %637 = vmatpush.bf16.msra.mxu2 %v1174_v20 }
  0x28   : > { %540 = vmatpush.bf16.msra.mxu0 %v979_v21  ;;  %1010 = vmatpush.bf16.msra.mxu3 %v979_v21  ;;  %v971_v21 = vld [vmem:[%s1165_s30 + $0x80] sm:$0xf0] }
  0x29   : > { %589 = vmatpush.bf16.msra.mxu1 %v987_v22 }
  0x2a   : > { %638 = vmatpush.bf16.msra.mxu2 %v1185_v23 }
  0x2b   : > { %541 = vmatmul.bf16.vlgmr.msra.gmra.mxu0 %v764_v32  ;;  %571 = vmatmul.bf16.vlgmr.msra.gmra.mxu3 %v836_v33  ;;  %v1252_v32 = vld [vmem:[%s1309_s2] ss:$0 sm:$0xff] }
  0x2c   : > { %1011 = vmatpush.bf16.msrb.mxu3 %v1079_v1  ;;  %590 = vmatmul.bf16.vlgmr.msra.gmra.mxu1 %v768_v34  ;;  %v801_v1 = vld [vmem:[%s1165_s30 + $0x54] sm:$0xf0] }
  0x2d   : > { %639 = vmatmul.bf16.vlgmr.msra.gmra.mxu2 %v772_v35 }
  0x30   : > { %1012 = vmatpush.bf16.msrb.mxu3 %v1094_v4  ;;  %v800_v4 = vor.u32 %v965_v61, %v799_v60 }
  0x34   : > { %1013 = vmatpush.bf16.msrb.mxu3 %v1109_v7 }
  0x38   : > { %1014 = vmatpush.bf16.msrb.mxu3 %v1124_v10  ;;  %v967_v10 = vld [vmem:[%s1165_s30 + $0x64] sm:$0xf] }
  0x3b   : > { %546 = vmatmul.bf16.gmra.mxu0 %v776_v44  ;;  %576 = vmatmul.bf16.gmra.mxu3 %v848_v45 }
  0x3c   : > { %1015 = vmatpush.bf16.msrb.mxu3 %v990_v13  ;;  %595 = vmatmul.bf16.gmra.mxu1 %v780_v46  ;;  %v813_v13 = vld [vmem:[%s1165_s30 + $0x6c] sm:$0xf0] }
  0x3d   : > { %644 = vmatmul.bf16.gmra.mxu2 %v784_v47  ;;  %v816_v18 = vor.u32 %v967_v10, %v813_v13 }
  0x40   : > { %1016 = vmatpush.bf16.msrb.mxu3 %v989_v16 }
  0x44   : > { %1017 = vmatpush.bf16.msrb.mxu3 %v988_v19 }
  0x48   : > { %1018 = vmatpush.bf16.msrb.mxu3 %v987_v22  ;;  %v970_v22 = vld [vmem:[%s1165_s30 + $0x7c] sm:$0xf] }
  0x49   : > { %v828_v30 = vor.u32 %v970_v22, %v825_v25 }
  0x4b   : > { %551 = vmatmul.bf16.gmra.mxu0 %v788_v56  ;;  %620 = vmatmul.bf16.vlgmr.msrb.gmra.mxu3 %v840_v57 }
  0x4c   : > { %1019 = vmatpush.bf16.msra.mxu3 %v1084_v2  ;;  %600 = vmatmul.bf16.gmra.mxu1 %v792_v58  ;;  %v807_v2 = vld [vmem:[%s1165_s30 + $0x50] sm:$0xf] }
  0x4d   : > { %649 = vmatmul.bf16.gmra.mxu2 %v796_v59  ;;  %v808_v7 = vor.u32 %v966_v3, %v807_v2 }
  0x50   : > { %1020 = vmatpush.bf16.msra.mxu3 %v1099_v5  ;;  %v804_v5 = vor.u32 %v964_v62, %v801_v1 }
  0x54   : > { %1021 = vmatpush.bf16.msra.mxu3 %v1114_v8  ;;  %v811_v8 = vld [vmem:[%s1165_s30 + $0x60] sm:$0xf] }
  0x55   : > { %v812_v16 = vor.u32 %v968_v9, %v811_v8 }
  0x58   : > { %1022 = vmatpush.bf16.msra.mxu3 %v1129_v11  ;;  %v843_v11 = vld [vmem:[%s1165_s30 + $0x98] sm:$0xf] }
  0x5b   : > { %556 = vmatmul.bf16.gmra.mxu0 %v800_v4  ;;  %625 = vmatmul.bf16.gmra.mxu3 %v852_v6 }
  0x5c   : > { %1023 = vmatpush.bf16.msra.mxu3 %v1144_v14  ;;  %605 = vmatmul.bf16.gmra.mxu1 %v804_v5  ;;  %v819_v14 = vld [vmem:[%s1165_s30 + $0x68] sm:$0xf] }
  0x5d   : > { %654 = vmatmul.bf16.gmra.mxu2 %v808_v7  ;;  %v820_v19 = vor.u32 %v969_v15, %v819_v14 }
  0x60   : > { %1024 = vmatpush.bf16.msra.mxu3 %v1157_v17  ;;  %v844_v17 = vor.u32 %v975_v12, %v843_v11 }
  0x64   : > { %1025 = vmatpush.bf16.msra.mxu3 %v1174_v20  ;;  %v823_v20 = vld [vmem:[%s1165_s30 + $0x78] sm:$0xf] }
  0x65   : > { %v824_v28 = vor.u32 %v971_v21, %v823_v20 }
  0x68   : > { %1026 = vmatpush.bf16.msra.mxu3 %v1185_v23  ;;  %v978_v23 = vld [vmem:[%s1165_s30 + $0xb8] sm:$0xf0] }
  0x69   : > { %v856_v29 = vor.u32 %v978_v23, %v855_v24 }
  0x6b   : > { %561 = vmatmul.bf16.gmra.mxu0 %v812_v16  ;;  %669 = vmatmul.bf16.vlgmr.msra.gmra.mxu3 %v844_v17 }
  0x6c   : > { %610 = vmatmul.bf16.gmra.mxu1 %v816_v18 }
  0x6d   : > { %659 = vmatmul.bf16.gmra.mxu2 %v820_v19 }
  0x7b   : > { %566 = vmatmul.bf16.gmra.mxu0 %v824_v28  ;;  %674 = vmatmul.bf16.gmra.mxu3 %v856_v29 }
  0x7c   : > { %615 = vmatmul.bf16.gmra.mxu1 %v828_v30 }
  0x7d   : > { %664 = vmatmul.bf16.gmra.mxu2 %v832_v31 }
  0xa8   : > { %v542_v33 = vpop.f32.mrf.mxu0 }
  0xa9   : > { %v543_v34 = vadd.f32 %v1252_v32, %v542_v33  ;;  %v591_v35 = vpop.f32.mrf.mxu1 }
  0xab   : > { %v592_v36 = vadd.f32 %v591_v35, %v543_v34 }
  0xae   : > { %v1256_v37 = vpop.f32.mrf.mxu3 }
  0xaf   : > { %v573_v28 = vadd.f32 %v1252_v32, %v1256_v37 }
  0xb0   : > { %v640_v38 = vpop.f32.mrf.mxu2  ;;  %v544_v40 = vpop.f32.mrf.mxu0 }
  0xb1   : > { %v641_v39 = vadd.f32 %v640_v38, %v592_v36  ;;  %v593_v41 = vpop.f32.mrf.mxu1  ;;  %v545_v42 = vadd.f32 %v1252_v32, %v544_v40 }
  0xb3   : > { %680 = vst [vmem:[%s1261_s21] sm:$0xff] %v641_v39  ;;  %v594_v43 = vadd.f32 %v593_v41, %v545_v42 }
  0xb6   : > { %v1265_v44 = vpop.f32.mrf.mxu3 }
  0xb7   : > { %v575_v40 = vadd.f32 %v1252_v32, %v1265_v44 }
  0xb8   : > { %v642_v45 = vpop.f32.mrf.mxu2  ;;  %v547_v47 = vpop.f32.mrf.mxu0 }
  0xb9   : > { %v643_v46 = vadd.f32 %v642_v45, %v594_v43  ;;  %v548_v48 = vadd.f32 %v1252_v32, %v547_v47  ;;  %v596_v49 = vpop.f32.mrf.mxu1 }
  0xbb   : > { %681 = vst [vmem:[%s1261_s21 + $0x8] sm:$0xff] %v643_v46  ;;  %v597_v50 = vadd.f32 %v596_v49, %v548_v48 }
  0xbe   : > { %v1269_v51 = vpop.f32.mrf.mxu3 }
  0xbf   : > { %v578_v49 = vadd.f32 %v1252_v32, %v1269_v51 }
  0xc0   : > { %v645_v52 = vpop.f32.mrf.mxu2  ;;  %v549_v54 = vpop.f32.mrf.mxu0 }
  0xc1   : > { %v646_v53 = vadd.f32 %v645_v52, %v597_v50  ;;  %v598_v55 = vpop.f32.mrf.mxu1  ;;  %v550_v56 = vadd.f32 %v1252_v32, %v549_v54 }
  0xc3   : > { %682 = vst [vmem:[%s1261_s21 + $0x10] sm:$0xff] %v646_v53  ;;  %v599_v57 = vadd.f32 %v598_v55, %v550_v56 }
  0xc6   : > { %v1273_v58 = vpop.f32.mrf.mxu3 }
  0xc8   : > { %v647_v59 = vpop.f32.mrf.mxu2  ;;  %v552_v61 = vpop.f32.mrf.mxu0 }
  0xc9   : > { %v648_v60 = vadd.f32 %v647_v59, %v599_v57  ;;  %v553_v62 = vadd.f32 %v1252_v32, %v552_v61  ;;  %v601_v63 = vpop.f32.mrf.mxu1 }
  0xcb   : > { %683 = vst [vmem:[%s1261_s21 + $0x18] sm:$0xff] %v648_v60  ;;  %v602_v0 = vadd.f32 %v601_v63, %v553_v62  ;;  %v580_v60 = vadd.f32 %v1252_v32, %v1273_v58 }
  0xce   : > { %v621_v1 = vpop.f32.mrf.mxu3 }
  0xcf   : > { %v622_v30 = vadd.f32 %v621_v1, %v573_v28 }
  0xd0   : > { %v650_v2 = vpop.f32.mrf.mxu2  ;;  %v554_v4 = vpop.f32.mrf.mxu0 }
  0xd1   : > { %v651_v3 = vadd.f32 %v650_v2, %v602_v0  ;;  %v603_v6 = vpop.f32.mrf.mxu1  ;;  %v555_v5 = vadd.f32 %v1252_v32, %v554_v4 }
  0xd3   : > { %684 = vst [vmem:[%s1261_s21 + $0x20] sm:$0xff] %v651_v3  ;;  %v604_v7 = vadd.f32 %v603_v6, %v555_v5 }
  0xd6   : > { %v623_v8 = vpop.f32.mrf.mxu3 }
  0xd7   : > { %v624_v41 = vadd.f32 %v623_v8, %v575_v40 }
  0xd8   : > { %v652_v9 = vpop.f32.mrf.mxu2  ;;  %v557_v11 = vpop.f32.mrf.mxu0 }
  0xd9   : > { %v653_v10 = vadd.f32 %v652_v9, %v604_v7  ;;  %v558_v12 = vadd.f32 %v1252_v32, %v557_v11  ;;  %v606_v13 = vpop.f32.mrf.mxu1 }
  0xdb   : > { %685 = vst [vmem:[%s1261_s21 + $0x28] sm:$0xff] %v653_v10  ;;  %v607_v14 = vadd.f32 %v606_v13, %v558_v12 }
  0xde   : > { %v626_v15 = vpop.f32.mrf.mxu3 }
  0xdf   : > { %v627_v53 = vadd.f32 %v626_v15, %v578_v49 }
  0xe0   : > { %v655_v16 = vpop.f32.mrf.mxu2  ;;  %v559_v18 = vpop.f32.mrf.mxu0 }
  0xe1   : > { %v656_v17 = vadd.f32 %v655_v16, %v607_v14  ;;  %v608_v19 = vpop.f32.mrf.mxu1  ;;  %v560_v20 = vadd.f32 %v1252_v32, %v559_v18 }
  0xe3   : > { %686 = vst [vmem:[%s1261_s21 + $0x30] sm:$0xff] %v656_v17  ;;  %v609_v21 = vadd.f32 %v608_v19, %v560_v20 }
  0xe6   : > { %v628_v22 = vpop.f32.mrf.mxu3 }
  0xe7   : > { %v629_v61 = vadd.f32 %v628_v22, %v580_v60 }
  0xe8   : > { %v657_v24 = vpop.f32.mrf.mxu2  ;;  %v562_v25 = vpop.f32.mrf.mxu0 }
  0xe9   : > { %v658_v23 = vadd.f32 %v657_v24, %v609_v21  ;;  %v563_v26 = vadd.f32 %v1252_v32, %v562_v25  ;;  %v611_v27 = vpop.f32.mrf.mxu1 }
  0xeb   : > { %687 = vst [vmem:[%s1261_s21 + $0x38] sm:$0xff] %v658_v23  ;;  %v612_v29 = vadd.f32 %v611_v27, %v563_v26 }
  0xee   : > { %v670_v31 = vpop.f32.mrf.mxu3 }
  0xef   : > { %v671_v34 = vadd.f32 %v670_v31, %v622_v30 }
  0xf0   : > { %v660_v33 = vpop.f32.mrf.mxu2  ;;  %v564_v36 = vpop.f32.mrf.mxu0 }
  0xf1   : > { %v661_v35 = vadd.f32 %v660_v33, %v612_v29  ;;  %692 = vst [vmem:[%s1261_s21 + $0x60] sm:$0xff] %v671_v34  ;;  %v613_v38 = vpop.f32.mrf.mxu1  ;;  %v565_v39 = vadd.f32 %v1252_v32, %v564_v36 }
  0xf3   : > { %688 = vst [vmem:[%s1261_s21 + $0x40] sm:$0xff] %v661_v35  ;;  %v614_v42 = vadd.f32 %v613_v38, %v565_v39 }
  0xf6   : > { %v672_v37 = vpop.f32.mrf.mxu3 }
  0xf7   : > { %v673_v45 = vadd.f32 %v672_v37, %v624_v41 }
  0xf8   : > { %v662_v43 = vpop.f32.mrf.mxu2  ;;  %v567_v47 = vpop.f32.mrf.mxu0 }
  0xf9   : > { %v663_v46 = vadd.f32 %v662_v43, %v614_v42  ;;  %693 = vst [vmem:[%s1261_s21 + $0x68] sm:$0xff] %v673_v45  ;;  %v568_v48 = vadd.f32 %v1252_v32, %v567_v47  ;;  %v616_v50 = vpop.f32.mrf.mxu1 }
  0xfb   : > { %689 = vst [vmem:[%s1261_s21 + $0x48] sm:$0xff] %v663_v46  ;;  %v617_v52 = vadd.f32 %v616_v50, %v568_v48 }
  0xfe   : > { %v675_v44 = vpop.f32.mrf.mxu3 }
  0xff   : > { %v676_v55 = vadd.f32 %v675_v44, %v627_v53 }
 0x100   : > { %v665_v54 = vpop.f32.mrf.mxu2  ;;  %v569_v57 = vpop.f32.mrf.mxu0 }
 0x101   : > { %v666_v56 = vadd.f32 %v665_v54, %v617_v52  ;;  %694 = vst [vmem:[%s1261_s21 + $0x70] sm:$0xff] %v676_v55  ;;  %v570_v59 = vadd.f32 %v1252_v32, %v569_v57  ;;  %v618_v62 = vpop.f32.mrf.mxu1 }
 0x103   : > { %690 = vst [vmem:[%s1261_s21 + $0x50] sm:$0xff] %v666_v56  ;;  %v619_v51 = vadd.f32 %v618_v62, %v570_v59 }
 0x106   : > { %v677_v63 = vpop.f32.mrf.mxu3 }
 0x107   : > { %v678_v1 = vadd.f32 %v677_v63, %v629_v61 }
 0x108   : > { %v667_v0 = vpop.f32.mrf.mxu2 }
 0x109   : > { %v668_v2 = vadd.f32 %v667_v0, %v619_v51  ;;  %695 = vst [vmem:[%s1261_s21 + $0x78] sm:$0xff] %v678_v1 }
 0x10b   : > { %691 = vst [vmem:[%s1261_s21 + $0x58] sm:$0xff] %v668_v2 }
 0x10c PF: > { %s13_s12 = sadd.s32 1, %s1043_s12  }
 0x10d   : > { %p10_p4 = scmp.ge.s32.totalorder %s13_s12, 5  }
 0x10f   :  { %12 = sbr.rel (!%p10_p4) target bundleno = 1 (0x1), region = 62 }

</bundles_post_ra>
